<compile_context>
chip_gen: v7x
topology: tpu7x:2x2x1
jax: 0.10.0
libtpu: 0.0.40
codegen_flags: <defaults>
</compile_context>

<pallas_src>
import jax
import jax.numpy as jnp
from jax.experimental import pallas as pl
from jax.experimental.pallas import tpu as pltpu


def _round_up(x, m):
    return ((x + m - 1) // m) * m


# ---------------------------------------------------------------------------
# Kernel: one batch tile of the whole ensemble.
# ---------------------------------------------------------------------------
def _fused_ensemble_kernel(x_ref, w1_ref, b1_ref, w2_ref, b2_ref, o_ref):
    # x_ref : (TB, D)        batch tile (grid axis 0 = batch tile, 'parallel')
    # w1_ref: (D,  E*H)      layer-1 weights, ensemble fused along lanes
    # b1_ref: (1,  E*H)      f32 bias row
    # w2_ref: (E*H, EO_pad)  block-diagonal layer-2 weights, padded to 128 lanes
    # b2_ref: (1,  EO_pad)   f32 bias row (zero in the pad columns)
    # o_ref : (TB, EO_pad)   lane-dense output slab -> unmasked full-width store
    x = x_ref[...].astype(w1_ref.dtype)            # matmul operand dtype (f32/bf16)
    h = jnp.dot(x, w1_ref[...], preferred_element_type=jnp.float32)
    h = jnp.maximum(h + b1_ref[...], 0.0)          # bias + ReLU in f32 (v5e VPU: no bf16)
    y = jnp.dot(h.astype(w2_ref.dtype), w2_ref[...],
                preferred_element_type=jnp.float32) + b2_ref[...]
    o_ref[...] = y.astype(o_ref.dtype)


# ---------------------------------------------------------------------------
# One-time (model-load-time) weight repacking.  Pure layout plumbing — do NOT
# call this per forward.
# ---------------------------------------------------------------------------
def pack_ensemble_weights(w1, b1, w2, b2, compute_dtype=jnp.float32):
    """w1: (E, D, H), b1: (E, H), w2: (E, H, O), b2: (E, O).

    compute_dtype: jnp.float32 (default, matches v5e) or jnp.bfloat16 on
    v6e/v7x for ~2x MXU throughput and half the weight DMA (f32 accumulation
    is kept inside the kernel).
    """
    E, D, H = w1.shape
    O = w2.shape[-1]
    EH, EO = E * H, E * O
    EO_pad = _round_up(EO, 128)   # lane-dense output columns (unmasked stores)

    # Layer 1: (E, D, H) -> (D, E*H): one (B,D) x (D,E*H) matmul computes every
    # model's hidden layer.
    w1_packed = jnp.transpose(w1, (1, 0, 2)).reshape(D, EH).astype(compute_dtype)
    b1_packed = b1.reshape(1, EH).astype(jnp.float32)

    # Layer 2: block-diagonal (E*H, E*O) via a broadcast against eye(E) (no
    # scatter), then zero-padded to EO_pad lanes.
    eye = jnp.eye(E, dtype=w2.dtype)
    w2_bd = (eye[:, None, :, None] * w2[:, :, None, :]).reshape(EH, EO)
    w2_bd = jnp.pad(w2_bd, ((0, 0), (0, EO_pad - EO))).astype(compute_dtype)
    b2_packed = jnp.pad(b2.reshape(1, EO), ((0, 0), (0, EO_pad - EO))).astype(jnp.float32)

    # TODO(synk): the block-diagonal layer 2 is E^2*H*O elements with (1-1/E)
    # structural zeros; once EH*EO_pad*itemsize nears the VMEM budget (64 MiB
    # on v7x) restructure layer 2 (grid axis over E, hidden slab resident)
    # instead of padding it out.
    return dict(w1=w1_packed, b1=b1_packed, w2=w2_bd, b2=b2_packed,
                E=E, D=D, H=H, O=O, EH=EH, EO=EO, EO_pad=EO_pad)


# ---------------------------------------------------------------------------
# Forward pass.
# ---------------------------------------------------------------------------
def _batch_tiling(B):
    """Large tiles amortize the ~0.35 us per-grid-step overhead; for batches
    above SPLIT_THRESHOLD always emit >= 2 tiles so the 'parallel' axis can
    shard across the two TensorCores of a v7x chip."""
    TB_MAX = 2048          # sweep 1024-4096 at production sizes
    SPLIT_THRESHOLD = 256  # above this, always >= 2 batch tiles
    b_r8 = max(8, _round_up(B, 8))
    if b_r8 <= SPLIT_THRESHOLD:
        tb = b_r8
    else:
        n_tiles = max(2, pl.cdiv(b_r8, TB_MAX))
        tb = _round_up(pl.cdiv(b_r8, n_tiles), 8)
    return tb, pl.cdiv(B, tb)


def _build_call(params, B, tb, grid, out_dtype, single_buffer_weights,
                vmem_limit_bytes, cost):
    D, EH, EO_pad = params["D"], params["EH"], params["EO_pad"]

    def _resident(shape):
        # Constant index map -> loaded once, resident in VMEM across all batch
        # tiles.  Single-buffer it when supported (halves resident footprint).
        if single_buffer_weights:
            return pl.BlockSpec(shape, lambda i: (0, 0), pipeline_mode=pl.Buffered(1))
        return pl.BlockSpec(shape, lambda i: (0, 0))

    return pl.pallas_call(
        _fused_ensemble_kernel,
        out_shape=jax.ShapeDtypeStruct((B, EO_pad), out_dtype),
        grid_spec=pltpu.PrefetchScalarGridSpec(
            num_scalar_prefetch=0,
            grid=grid,
            in_specs=[
                pl.BlockSpec((tb, D), lambda i: (i, 0)),   # batch tile of x
                _resident((D, EH)),
                _resident((1, EH)),
                _resident((EH, EO_pad)),
                _resident((1, EO_pad)),
            ],
            out_specs=pl.BlockSpec((tb, EO_pad), lambda i: (i, 0)),
        ),
        compiler_params=pltpu.CompilerParams(
            # independent batch tiles -> shard across v7x's 2 TensorCores
            dimension_semantics=("parallel",),
            vmem_limit_bytes=vmem_limit_bytes,
        ),
        cost_estimate=cost,
    )


def ensemble_forward_slab(x, params):
    """Raw kernel output: (B, EO_pad) lane-dense slab (valid columns [:E*O]).

    No whole-array padding of x: if the batch does not divide the tile, the
    boundary block is handled by Pallas (tail reads unspecified, tail writes
    masked) and those rows never escape the valid region.
    """
    B, D = x.shape
    assert D == params["D"], "input feature dim mismatch"
    EH, EO_pad = params["EH"], params["EO_pad"]
    w_itemsize = params["w1"].dtype.itemsize

    tb, n_tiles = _batch_tiling(B)
    grid = (n_tiles,)

    # MXU flops actually executed (includes the structural-zero blocks of the
    # block-diagonal layer 2 and the lane padding).
    flops = 2 * B * D * EH + 2 * B * EH * EO_pad
    bytes_accessed = (B * D * 4 + B * EO_pad * 4
                      + (D * EH + EH * EO_pad) * w_itemsize
                      + (EH + EO_pad) * 4)
    cost = pl.CostEstimate(flops=flops, transcendentals=0,
                           bytes_accessed=bytes_accessed)

    # Explicit VMEM budget: double-buffered x/out tiles + resident weights +
    # hidden-activation staging, with headroom; never below the default scoped
    # limit (so it can only relax the compiler's constraint), capped under the
    # v7x 64 MiB physical VMEM.
    vmem_est = (2 * tb * (D + EO_pad) * 4
                + 2 * tb * EH * 4
                + 2 * (D * EH + EH * EO_pad) * w_itemsize
                + 2 * (EH + EO_pad) * 4)
    vmem_limit = int(min(max(vmem_est + (8 << 20), 32 << 20), 48 << 20))

    args = (x, params["w1"], params["b1"], params["w2"], params["b2"])
    try:
        out = _build_call(params, B, tb, grid, x.dtype, True, vmem_limit, cost)(*args)
    except Exception:
        # pl.Buffered(1) not accepted at the pallas_call level on this
        # JAX/libtpu build -> identical kernel with default double buffering.
        out = _build_call(params, B, tb, grid, x.dtype, False, vmem_limit, cost)(*args)
    return out


def ensemble_predictions(x, params):
    """(B, E, O) predictions; consumed directly by joint_predict/query without
    materializing the stacked (E, B, O) layout (saves an HBM pass over output)."""
    B = x.shape[0]
    E, O = params["E"], params["O"]
    slab = ensemble_forward_slab(x, params)
    return slab[:, : E * O].reshape(B, E, O)


def ensemble_forward(x, params):
    """torch.stack([model(x) for model in ensemble]) contract: (E, B, O)."""
    return jnp.transpose(ensemble_predictions(x, params), (1, 0, 2))


def joint_predict(x, params):
    """Mean prediction over the ensemble: (B, O)."""
    return ensemble_predictions(x, params).mean(axis=1)


def query(candidate_batch, params, n_queries=1):
    """Candidates maximizing the summed per-output variance across models."""
    preds = ensemble_predictions(candidate_batch, params)          # (N, E, O)
    deviation = jnp.var(preds, axis=1, ddof=1).sum(axis=-1)        # (N,)
    idx = jax.lax.top_k(deviation, n_queries)[1]
    return candidate_batch[idx]


def _reference_forward(x, w1, b1, w2, b2):
    # pure-JAX reference: stack of per-model MLP predictions
    h = jnp.maximum(jnp.einsum("bd,edh->ebh", x, w1) + b1[:, None, :], 0.0)
    return jnp.einsum("ebh,eho->ebo", h, w2) + b2[:, None, :]


if __name__ == "__main__":
    # Small deterministic setup: E models, each an MLP D -> H -> O.
    # E*H = 128 -> the fused layer-1 matmul fills the lane dimension exactly.
    E, B, D, H, O = 4, 8, 6, 32, 3

    key = jax.random.PRNGKey(0)
    kx, k1, k2, k3, k4 = jax.random.split(key, 5)

    x = jax.random.normal(kx, (B, D), dtype=jnp.float32)
    w1 = jax.random.normal(k1, (E, D, H), dtype=jnp.float32) * 0.1
    b1 = jax.random.normal(k2, (E, H), dtype=jnp.float32) * 0.1
    w2 = jax.random.normal(k3, (E, H, O), dtype=jnp.float32) * 0.1
    b2 = jax.random.normal(k4, (E, O), dtype=jnp.float32) * 0.1

    # One-time, load-time weight repacking.  On v6e/v7x pass
    # compute_dtype=jnp.bfloat16 for ~2x MXU throughput (loosen tolerances).
    params = pack_ensemble_weights(w1, b1, w2, b2)

    out = jax.block_until_ready(ensemble_forward(x, params))
    ref = _reference_forward(x, w1, b1, w2, b2)
    assert out.shape == (E, B, O)
    assert jnp.allclose(out, ref, atol=1e-5, rtol=1e-5)

    # joint_predict / query consume the (B, E, O) slab directly (no transpose).
    jp = jax.block_until_ready(joint_predict(x, params))
    assert jnp.allclose(jp, ref.mean(axis=0), atol=1e-5, rtol=1e-5)
    q = jax.block_until_ready(query(x, params, n_queries=2))
    assert q.shape == (2, D)

    # TODO(synk): fit()/test()/online_fit()/best_predict() are host-side
    # training / bookkeeping loops, not kernels; query()/joint_predict() above
    # cover the inference-side math over the stacked predictions.
    print("KERNEL_OK")
</pallas_src>

<mosaic_0001>
module attributes {stable_mosaic.version = 11 : i64} {
  func.func @_fused_ensemble_kernel(%arg0: i32, %arg1: memref<8x6xf32, #tpu.memory_space<vmem>>, %arg2: memref<6x128xf32, #tpu.memory_space<vmem>>, %arg3: memref<1x128xf32, #tpu.memory_space<vmem>>, %arg4: memref<128x128xf32, #tpu.memory_space<vmem>>, %arg5: memref<1x128xf32, #tpu.memory_space<vmem>>, %arg6: memref<8x128xf32, #tpu.memory_space<vmem>>) attributes {dimension_semantics = [#tpu.dimension_semantics<parallel>], iteration_bounds = array<i64: 1>, scalar_prefetch = 0 : i64, scratch_operands = 0 : i64, tpu.core_type = #tpu.core_type<tc>, window_params = [{transform_indices = @transform_0, window_bounds = array<i64: 8, 6>}, {pipeline_mode = #tpu.pipeline_mode<synchronous>, transform_indices = @transform_1, window_bounds = array<i64: 6, 128>}, {pipeline_mode = #tpu.pipeline_mode<synchronous>, transform_indices = @transform_2, window_bounds = array<i64: 1, 128>}, {pipeline_mode = #tpu.pipeline_mode<synchronous>, transform_indices = @transform_3, window_bounds = array<i64: 128, 128>}, {pipeline_mode = #tpu.pipeline_mode<synchronous>, transform_indices = @transform_4, window_bounds = array<i64: 1, 128>}, {transform_indices = @transform_5, window_bounds = array<i64: 8, 128>}]} {
    %c0 = arith.constant 0 : index
    %c0_0 = arith.constant 0 : index
    %0 = vector.load %arg1[%c0, %c0_0] : memref<8x6xf32, #tpu.memory_space<vmem>>, vector<8x6xf32>
    %c0_1 = arith.constant 0 : index
    %c0_2 = arith.constant 0 : index
    %1 = vector.load %arg2[%c0_1, %c0_2] : memref<6x128xf32, #tpu.memory_space<vmem>>, vector<6x128xf32>
    %cst = arith.constant dense<0.000000e+00> : vector<8x128xf32>
    %2 = tpu.matmul %0, %1, %cst {dimension_numbers = #tpu.dot_dimension_numbers<[1], [0], [0], [1], [0, 0, 1, 1], [], []>} : vector<8x6xf32>, vector<6x128xf32>, vector<8x128xf32> -> vector<8x128xf32>
    %c0_3 = arith.constant 0 : index
    %c0_4 = arith.constant 0 : index
    %3 = vector.load %arg3[%c0_3, %c0_4] : memref<1x128xf32, #tpu.memory_space<vmem>>, vector<1x128xf32>
    %4 = vector.broadcast %3 : vector<1x128xf32> to vector<8x128xf32>
    %5 = arith.addf %2, %4 : vector<8x128xf32>
    %cst_5 = arith.constant 0.000000e+00 : f32
    %6 = vector.broadcast %cst_5 : f32 to vector<8x128xf32>
    %7 = arith.maximumf %5, %6 : vector<8x128xf32>
    %c0_6 = arith.constant 0 : index
    %c0_7 = arith.constant 0 : index
    %8 = vector.load %arg4[%c0_6, %c0_7] : memref<128x128xf32, #tpu.memory_space<vmem>>, vector<128x128xf32>
    %cst_8 = arith.constant dense<0.000000e+00> : vector<8x128xf32>
    %9 = tpu.matmul %7, %8, %cst_8 {dimension_numbers = #tpu.dot_dimension_numbers<[1], [0], [0], [1], [0, 0, 1, 1], [], []>} : vector<8x128xf32>, vector<128x128xf32>, vector<8x128xf32> -> vector<8x128xf32>
    %c0_9 = arith.constant 0 : index
    %c0_10 = arith.constant 0 : index
    %10 = vector.load %arg5[%c0_9, %c0_10] : memref<1x128xf32, #tpu.memory_space<vmem>>, vector<1x128xf32>
    %11 = vector.broadcast %10 : vector<1x128xf32> to vector<8x128xf32>
    %12 = arith.addf %9, %11 : vector<8x128xf32>
    %c0_11 = arith.constant 0 : index
    %c0_12 = arith.constant 0 : index
    %13 = vector.load %arg6[%c0_11, %c0_12] : memref<8x128xf32, #tpu.memory_space<vmem>>, vector<8x128xf32>
    tpu.vector_store %arg6[%c0_11, %c0_12], %12 {strides = array<i32>} : memref<8x128xf32, #tpu.memory_space<vmem>>, vector<8x128xf32>,
    return
  }
  func.func @transform_0(%arg0: i32) -> (i32, i32) {
    %c0_i32 = arith.constant 0 : i32
    %c0_i32_0 = arith.constant 0 : i32
    return %arg0, %c0_i32 : i32, i32
  }
  func.func @transform_1(%arg0: i32) -> (i32, i32) {
    %c0_i32 = arith.constant 0 : i32
    %c0_i32_0 = arith.constant 0 : i32
    %c0_i32_1 = arith.constant 0 : i32
    return %c0_i32, %c0_i32_0 : i32, i32
  }
  func.func @transform_2(%arg0: i32) -> (i32, i32) {
    %c0_i32 = arith.constant 0 : i32
    %c0_i32_0 = arith.constant 0 : i32
    %c0_i32_1 = arith.constant 0 : i32
    return %c0_i32, %c0_i32_0 : i32, i32
  }
  func.func @transform_3(%arg0: i32) -> (i32, i32) {
    %c0_i32 = arith.constant 0 : i32
    %c0_i32_0 = arith.constant 0 : i32
    %c0_i32_1 = arith.constant 0 : i32
    return %c0_i32, %c0_i32_0 : i32, i32
  }
  func.func @transform_4(%arg0: i32) -> (i32, i32) {
    %c0_i32 = arith.constant 0 : i32
    %c0_i32_0 = arith.constant 0 : i32
    %c0_i32_1 = arith.constant 0 : i32
    return %c0_i32, %c0_i32_0 : i32, i32
  }
  func.func @transform_5(%arg0: i32) -> (i32, i32) {
    %c0_i32 = arith.constant 0 : i32
    %c0_i32_0 = arith.constant 0 : i32
    return %arg0, %c0_i32 : i32, i32
  }
}

module attributes {stable_mosaic.version = 11 : i64} {
  func.func @_fused_ensemble_kernel(%arg0: i32, %arg1: memref<8x6xf32, #tpu.memory_space<vmem>>, %arg2: memref<6x128xf32, #tpu.memory_space<vmem>>, %arg3: memref<1x128xf32, #tpu.memory_space<vmem>>, %arg4: memref<128x128xf32, #tpu.memory_space<vmem>>, %arg5: memref<1x128xf32, #tpu.memory_space<vmem>>, %arg6: memref<8x128xf32, #tpu.memory_space<vmem>>) attributes {dimension_semantics = [#tpu.dimension_semantics<parallel>], iteration_bounds = array<i64: 1>, scalar_prefetch = 0 : i64, scratch_operands = 0 : i64, tpu.core_type = #tpu.core_type<tc>, window_params = [{transform_indices = @transform_0, window_bounds = array<i64: 8, 6>}, {pipeline_mode = #tpu.pipeline_mode<synchronous>, transform_indices = @transform_1, window_bounds = array<i64: 6, 128>}, {pipeline_mode = #tpu.pipeline_mode<synchronous>, transform_indices = @transform_2, window_bounds = array<i64: 1, 128>}, {pipeline_mode = #tpu.pipeline_mode<synchronous>, transform_indices = @transform_3, window_bounds = array<i64: 128, 128>}, {pipeline_mode = #tpu.pipeline_mode<synchronous>, transform_indices = @transform_4, window_bounds = array<i64: 1, 128>}, {transform_indices = @transform_5, window_bounds = array<i64: 8, 128>}]} {
    %c0 = arith.constant 0 : index
    %c0_0 = arith.constant 0 : index
    %0 = vector.load %arg1[%c0, %c0_0] : memref<8x6xf32, #tpu.memory_space<vmem>>, vector<8x6xf32>
    %c0_1 = arith.constant 0 : index
    %c0_2 = arith.constant 0 : index
    %1 = vector.load %arg2[%c0_1, %c0_2] : memref<6x128xf32, #tpu.memory_space<vmem>>, vector<6x128xf32>
    %cst = arith.constant dense<0.000000e+00> : vector<8x128xf32>
    %2 = tpu.matmul %0, %1, %cst {dimension_numbers = #tpu.dot_dimension_numbers<[1], [0], [0], [1], [0, 0, 1, 1], [], []>} : vector<8x6xf32>, vector<6x128xf32>, vector<8x128xf32> -> vector<8x128xf32>
    %c0_3 = arith.constant 0 : index
    %c0_4 = arith.constant 0 : index
    %3 = vector.load %arg3[%c0_3, %c0_4] : memref<1x128xf32, #tpu.memory_space<vmem>>, vector<1x128xf32>
    %4 = vector.broadcast %3 : vector<1x128xf32> to vector<8x128xf32>
    %5 = arith.addf %2, %4 : vector<8x128xf32>
    %cst_5 = arith.constant 0.000000e+00 : f32
    %6 = vector.broadcast %cst_5 : f32 to vector<8x128xf32>
    %7 = arith.maximumf %5, %6 : vector<8x128xf32>
    %c0_6 = arith.constant 0 : index
    %c0_7 = arith.constant 0 : index
    %8 = vector.load %arg4[%c0_6, %c0_7] : memref<128x128xf32, #tpu.memory_space<vmem>>, vector<128x128xf32>
    %cst_8 = arith.constant dense<0.000000e+00> : vector<8x128xf32>
    %9 = tpu.matmul %7, %8, %cst_8 {dimension_numbers = #tpu.dot_dimension_numbers<[1], [0], [0], [1], [0, 0, 1, 1], [], []>} : vector<8x128xf32>, vector<128x128xf32>, vector<8x128xf32> -> vector<8x128xf32>
    %c0_9 = arith.constant 0 : index
    %c0_10 = arith.constant 0 : index
    %10 = vector.load %arg5[%c0_9, %c0_10] : memref<1x128xf32, #tpu.memory_space<vmem>>, vector<1x128xf32>
    %11 = vector.broadcast %10 : vector<1x128xf32> to vector<8x128xf32>
    %12 = arith.addf %9, %11 : vector<8x128xf32>
    %c0_11 = arith.constant 0 : index
    %c0_12 = arith.constant 0 : index
    %13 = vector.load %arg6[%c0_11, %c0_12] : memref<8x128xf32, #tpu.memory_space<vmem>>, vector<8x128xf32>
    tpu.vector_store %arg6[%c0_11, %c0_12], %12 {strides = array<i32>} : memref<8x128xf32, #tpu.memory_space<vmem>>, vector<8x128xf32>,
    return
  }
  func.func @transform_0(%arg0: i32) -> (i32, i32) {
    %c0_i32 = arith.constant 0 : i32
    %c0_i32_0 = arith.constant 0 : i32
    return %arg0, %c0_i32 : i32, i32
  }
  func.func @transform_1(%arg0: i32) -> (i32, i32) {
    %c0_i32 = arith.constant 0 : i32
    %c0_i32_0 = arith.constant 0 : i32
    %c0_i32_1 = arith.constant 0 : i32
    return %c0_i32, %c0_i32_0 : i32, i32
  }
  func.func @transform_2(%arg0: i32) -> (i32, i32) {
    %c0_i32 = arith.constant 0 : i32
    %c0_i32_0 = arith.constant 0 : i32
    %c0_i32_1 = arith.constant 0 : i32
    return %c0_i32, %c0_i32_0 : i32, i32
  }
  func.func @transform_3(%arg0: i32) -> (i32, i32) {
    %c0_i32 = arith.constant 0 : i32
    %c0_i32_0 = arith.constant 0 : i32
    %c0_i32_1 = arith.constant 0 : i32
    return %c0_i32, %c0_i32_0 : i32, i32
  }
  func.func @transform_4(%arg0: i32) -> (i32, i32) {
    %c0_i32 = arith.constant 0 : i32
    %c0_i32_0 = arith.constant 0 : i32
    %c0_i32_1 = arith.constant 0 : i32
    return %c0_i32, %c0_i32_0 : i32, i32
  }
  func.func @transform_5(%arg0: i32) -> (i32, i32) {
    %c0_i32 = arith.constant 0 : i32
    %c0_i32_0 = arith.constant 0 : i32
    return %arg0, %c0_i32 : i32, i32
  }
}

</mosaic_0001>

<bundles_post_ra>
// kernel: tpu_custom_call.1
= control target key start
LH: loop header
LB: loop body
LE: loop exit
PB: predicated region body
PF: predicated region fallthrough
CT: control target
= control target key end

     0   :  { %10 = vsyncpa [#allocation3], 0  ;;  %s539_s0 = inlined_call_operand.hbm [shape: f32[8,6], index: 0, kind: input, shape index: {}]   ;;  %s540_s1 = inlined_call_operand.hbm [shape: f32[6,128], index: 1, kind: input, shape index: {}]   ;;  %s541_s2 = inlined_call_operand.vmem [shape: f32[1,128], index: 2, kind: input, shape index: {}]   ;;  %s542_s3 = inlined_call_operand.hbm [shape: f32[128,128], index: 3, kind: input, shape index: {}]   ;;  %s543_s4 = inlined_call_operand.vmem [shape: f32[1,128], index: 4, kind: input, shape index: {}]   ;;  %s544_s5 = inlined_call_operand.hbm [shape: f32[8,128], index: 5, kind: output, shape index: {}]  }
   0x1   :  { %11 = vsyncpa [#allocation6], 0 }
   0x2   :  { %12 = vsyncpa [#allocation4], 0  ;;  %s446_s18 = smov [#allocation5]   ;;  %s447_s20 = smov [#allocation2]  }
   0x3   :  { %s29_s19 = sshll.u32 %s446_s18, 4  ;;  %s19_s21 = sshll.u32 %s447_s20, 4  ;;  %s30_s19 = int_to_ptr.vmem [resolvable:$true] %s29_s19  ;;  %s20_s21 = int_to_ptr.vmem [resolvable:$true] %s19_s21 }
   0x4   :  { %s352_s24 = scalar_lea.hbm %s540_s1, 128 }
   0x5   :  { %p353_p0 = scmp.ne.s32.totalorder %s540_s1, %s352_s24  ;;  %p356_p1 = scmp.lt.u32.totalorder %s352_s24, %s540_s1 }
   0x7   :  { %p358_p2 = pnand %p356_p1, %p353_p0 }
   0x9   :  { %361 = shalt.err (!%p358_p2)
}
   0xa   :  { %s362_s29 = scalar_lea.vmem %s30_s19, 128  ;;  %p367_p4 = scmp.lt.s32.totalorder %s30_s19, %s30_s19 }
   0xb   :  { %p363_p3 = scmp.ne.s32.totalorder %s30_s19, %s362_s29  ;;  %p368_p5 = scmp.lt.s32.totalorder %s362_s29, %s362_s29 }
   0xd   :  { %p369_p6 = por %p368_p5, %p367_p4 }
   0xf   :  { %p370_p7 = pnand %p369_p6, %p363_p3 }
  0x11   :  { %373 = shalt.err (!%p370_p7)
}
  0x12   :  { %32 = dma.hbm_to_vmem [thread:$0]  %s540_s1, 128, %s30_s19, [#allocation6]  }
  0x13   :  { %s374_s9 = scalar_lea.hbm %s539_s0, 128 }
  0x14   :  { %p375_p8 = scmp.ne.s32.totalorder %s539_s0, %s374_s9  ;;  %p378_p9 = scmp.lt.u32.totalorder %s374_s9, %s539_s0 }
  0x16   :  { %p380_p10 = pnand %p378_p9, %p375_p8 }
  0x18   :  { %383 = shalt.err (!%p380_p10)
}
  0x19   :  { %s384_s14 = scalar_lea.vmem %s20_s21, 128  ;;  %p389_p12 = scmp.lt.s32.totalorder %s20_s21, %s20_s21 }
  0x1a   :  { %p385_p11 = scmp.ne.s32.totalorder %s20_s21, %s384_s14  ;;  %p390_p13 = scmp.lt.s32.totalorder %s384_s14, %s384_s14 }
  0x1c   :  { %p391_p0 = por %p390_p13, %p389_p12 }
  0x1e   :  { %p392_p1 = pnand %p391_p0, %p385_p11 }
  0x20   :  { %395 = shalt.err (!%p392_p1)
}
  0x21   :  { %22 = dma.hbm_to_vmem [thread:$0]  %s539_s0, 128, %s20_s21, [#allocation3]  }
  0x22   :  { %s448_s16 = smov [#allocation7]   ;;  %s396_s20 = scalar_lea.hbm %s542_s3, 2048 }
  0x23   :  { %s40_s17 = sshll.u32 %s448_s16, 4  ;;  %p397_p2 = scmp.ne.s32.totalorder %s542_s3, %s396_s20  ;;  %s41_s17 = int_to_ptr.vmem [resolvable:$true] %s40_s17 }
  0x24   :  { %p400_p3 = scmp.lt.u32.totalorder %s396_s20, %s542_s3 }
  0x26   :  { %p402_p4 = pnand %p400_p3, %p397_p2 }
  0x28   :  { %405 = shalt.err (!%p402_p4)
}
  0x29   :  { %s406_s26 = scalar_lea.vmem %s41_s17, 2048  ;;  %p411_p6 = scmp.lt.s32.totalorder %s41_s17, %s41_s17 }
  0x2a   :  { %p407_p5 = scmp.ne.s32.totalorder %s41_s17, %s406_s26  ;;  %p412_p7 = scmp.lt.s32.totalorder %s406_s26, %s406_s26 }
  0x2c   :  { %p413_p8 = por %p412_p7, %p411_p6 }
  0x2e   :  { %p414_p9 = pnand %p413_p8, %p407_p5 }
  0x30   :  { %417 = shalt.err (!%p414_p9)
}
  0x31   :  { %s449_s0 = smov 128   ;;  %s450_s21 = smov 8  }
  0x32   :  { %46 = dma.hbm_to_vmem [thread:$0]  %s542_s3, 2048, %s41_s17, [#allocation6], %s449_s0, %s449_s0, %s450_s21  }
  0x33   :  { %440 = dma.done.wait [#allocation3], 128  }
  0x34   :  { %441 = vsyncadd [#allocation3], 4294967168 }
  0x35   :  { %442 = dma.done.wait [#allocation6], 2176  }
  0x36   :  { %443 = vsyncadd [#allocation6], 4294965120  ;;  %v451_v0 = vmov 0.0   ;;  %vm452_vm0 = vmmov 0   ;;  %v453_v1 = vmov 0.0|0.0   ;;  %vm71_vm1 = vcmask 1045504  }
  0x37   :  { %279 = vmatprep.subr.mxu0 %v451_v0  ;;  %281 = vmatprep.mubr.msk.f32.mxu0 %vm452_vm0, %v451_v0  ;;  %vm67_vm2 = vcmask 48128   ;;  %v59_v2 = vld [vmem:[#allocation5] sm:$0x3f]  ;;  %v58_v3 = vld [vmem:[#allocation2] sm:$0xff]  ;;  %v146_v4 = vld [vmem:[#allocation7] sm:$0xff]  ;;  %s454_s7 = smov [#allocation8]  }
  0x38   :  { %319 = vmatprep.subr.bf16.mxu1 %v453_v1  ;;  %316 = vmatprep.mubr.msk.f32.mxu1 %vm452_vm0, %v451_v0  ;;  %v147_v5 = vld [vmem:[#allocation7 + $0x8] sm:$0xff]  ;;  %v148_v6 = vld [vmem:[#allocation7 + $0x10] sm:$0xff]  ;;  %v149_v7 = vld [vmem:[#allocation7 + $0x18] sm:$0xff]  ;;  %s246_s8 = sshll.u32 %s454_s7, 4  ;;  %s247_s8 = int_to_ptr.vmem [resolvable:$true] %s246_s8 }
  0x39   :  { %280 = vmatpush3.msk.msra.mxu0 %vm71_vm1, %v59_v2  ;;  %v320_v8 = vpack.c.bf16 %v147_v5, %v146_v4  ;;  %v323_v9 = vpack.c.bf16 %v149_v7, %v148_v6  ;;  %v150_v10 = vld [vmem:[#allocation7 + $0x20] sm:$0xff]  ;;  %v151_v11 = vld [vmem:[#allocation7 + $0x28] sm:$0xff]  ;;  %v152_v13 = vld [vmem:[#allocation7 + $0x30] sm:$0xff]  ;;  %s418_s9 = scalar_lea.vmem %s247_s8, 128  ;;  %p423_p11 = scmp.lt.s32.totalorder %s247_s8, %s247_s8 }
  0x3a   :  { %282 = vmatmul.mubr.msk.f32.vlgmr.msra.gmra.mrb[0].mxu0 %vm67_vm2, %v58_v3  ;;  %v326_v12 = vpack.c.bf16 %v151_v11, %v150_v10  ;;  %v153_v14 = vld [vmem:[#allocation7 + $0x38] sm:$0xff]  ;;  %v154_v16 = vld [vmem:[#allocation7 + $0x40] sm:$0xff]  ;;  %v155_v17 = vld [vmem:[#allocation7 + $0x48] sm:$0xff]  ;;  %p419_p10 = scmp.ne.s32.totalorder %s247_s8, %s418_s9  ;;  %p424_p12 = scmp.lt.s32.totalorder %s418_s9, %s418_s9 }
  0x3b   :  { %321 = vmatpush3.bf16.msra.mxu1 %v320_v8  ;;  %v329_v15 = vpack.c.bf16 %v153_v14, %v152_v13  ;;  %v332_v18 = vpack.c.bf16 %v155_v17, %v154_v16  ;;  %v156_v19 = vld [vmem:[#allocation7 + $0x50] sm:$0xff]  ;;  %v157_v20 = vld [vmem:[#allocation7 + $0x58] sm:$0xff]  ;;  %v158_v22 = vld [vmem:[#allocation7 + $0x60] sm:$0xff] }
  0x3c   :  { %322 = vmatprep.subr.bf16.mxu1 %v453_v1  ;;  %v335_v21 = vpack.c.bf16 %v157_v20, %v156_v19  ;;  %v159_v23 = vld [vmem:[#allocation7 + $0x68] sm:$0xff]  ;;  %v160_v25 = vld [vmem:[#allocation7 + $0x70] sm:$0xff]  ;;  %v161_v26 = vld [vmem:[#allocation7 + $0x78] sm:$0xff]  ;;  %p425_p13 = por %p424_p12, %p423_p11 }
  0x3d   :  { %v338_v24 = vpack.c.bf16 %v159_v23, %v158_v22  ;;  %v341_v27 = vpack.c.bf16 %v161_v26, %v160_v25  ;;  %v256_v28 = vld [vmem:[%s541_s2] ss:$0 sm:$0xff] }
  0x3e   :  { %v259_v33 = vld [vmem:[%s543_s4] ss:$0 sm:$0xff]  ;;  %p426_p0 = pnand %p425_p13, %p419_p10 }
  0x3f   :  { %324 = vmatpush3.bf16.msra.mxu1 %v323_v9 }
  0x40   :  { %325 = vmatprep.subr.bf16.mxu1 %v453_v1 }
  0x43   :  { %327 = vmatpush3.bf16.msra.mxu1 %v326_v12 }
  0x44   :  { %328 = vmatprep.subr.bf16.mxu1 %v453_v1 }
  0x47   :  { %330 = vmatpush3.bf16.msra.mxu1 %v329_v15 }
  0x48   :  { %331 = vmatprep.subr.bf16.mxu1 %v453_v1 }
  0x4b   :  { %333 = vmatpush3.bf16.msra.mxu1 %v332_v18 }
  0x4c   :  { %334 = vmatprep.subr.bf16.mxu1 %v453_v1 }
  0x4f   :  { %336 = vmatpush3.bf16.msra.mxu1 %v335_v21 }
  0x50   :  { %337 = vmatprep.subr.bf16.mxu1 %v453_v1 }
  0x53   :  { %339 = vmatpush3.bf16.msra.mxu1 %v338_v24 }
  0x54   :  { %340 = vmatprep.subr.bf16.mxu1 %v453_v1 }
  0x57   :  { %342 = vmatpush3.bf16.msra.mxu1 %v341_v27 }
 0x10d   :  { %v141_v29 = vpop.f32.mrb[0].mxu0 }
 0x10e   :  { %v142_v30 = vadd.f32 %v256_v28, %v141_v29  ;;  %v283_v31 = vpop.f32.mrb[1].mxu0 }
 0x110   :  { %v145_v32 = vmax.f32 %v142_v30, 0.0 }
 0x112   :  { %317 = vmatmul.mubr.f32.vlgmr.msra.gmra.mrb[0].mxu1 %v145_v32 }
 0x1e5   :  { %v235_v34 = vpop.f32.mrb[0].mxu1 }
 0x1e6   :  { %v236_v35 = vadd.f32 %v259_v33, %v235_v34  ;;  %v318_v36 = vpop.f32.mrb[1].mxu1 }
 0x1e8   :  { %239 = vst [vmem:[#allocation8] sm:$0xff] %v236_v35 }
 0x1e9   :  { %429 = shalt.err (!%p426_p0)
}
 0x1ea   :  { %s430_s11 = scalar_lea.hbm %s544_s5, 128 }
 0x1eb   :  { %p431_p1 = scmp.ne.s32.totalorder %s544_s5, %s430_s11  ;;  %p434_p2 = scmp.lt.u32.totalorder %s430_s11, %s544_s5 }
 0x1ed   :  { %p436_p3 = pnand %p434_p2, %p431_p1 }
 0x1ef   :  { %439 = shalt.err (!%p436_p3)
}
 0x1f0   :  { %249 = dma.vmem_to_hbm [thread:$0]  %s247_s8, 128, %s544_s5, [#allocation4]  }
 0x1f1   :  { %444 = dma.done.wait [#allocation4], 128  }
 0x1f2   :  { %445 = vsyncadd [#allocation4], 4294967168 }
 0x1f3   :  { %253 = vsyncpa [#allocation3], 1 }
 0x1f4   :  { %254 = vsyncpa [#allocation6], 1 }
 0x1f5   :  { %255 = vsyncpa [#allocation4], 1 }

// kernel: tpu_custom_call.1
= control target key start
LH: loop header
LB: loop body
LE: loop exit
PB: predicated region body
PF: predicated region fallthrough
CT: control target
= control target key end

     0   :  { %10 = vsyncpa [#allocation3], 0  ;;  %s539_s0 = inlined_call_operand.hbm [shape: f32[8,6], index: 0, kind: input, shape index: {}]   ;;  %s540_s1 = inlined_call_operand.hbm [shape: f32[6,128], index: 1, kind: input, shape index: {}]   ;;  %s541_s2 = inlined_call_operand.vmem [shape: f32[1,128], index: 2, kind: input, shape index: {}]   ;;  %s542_s3 = inlined_call_operand.hbm [shape: f32[128,128], index: 3, kind: input, shape index: {}]   ;;  %s543_s4 = inlined_call_operand.vmem [shape: f32[1,128], index: 4, kind: input, shape index: {}]   ;;  %s544_s5 = inlined_call_operand.hbm [shape: f32[8,128], index: 5, kind: output, shape index: {}]  }
   0x1   :  { %11 = vsyncpa [#allocation6], 0 }
   0x2   :  { %12 = vsyncpa [#allocation4], 0  ;;  %s446_s18 = smov [#allocation5]   ;;  %s447_s20 = smov [#allocation2]  }
   0x3   :  { %s29_s19 = sshll.u32 %s446_s18, 4  ;;  %s19_s21 = sshll.u32 %s447_s20, 4  ;;  %s30_s19 = int_to_ptr.vmem [resolvable:$true] %s29_s19  ;;  %s20_s21 = int_to_ptr.vmem [resolvable:$true] %s19_s21 }
   0x4   :  { %s352_s24 = scalar_lea.hbm %s540_s1, 128 }
   0x5   :  { %p353_p0 = scmp.ne.s32.totalorder %s540_s1, %s352_s24  ;;  %p356_p1 = scmp.lt.u32.totalorder %s352_s24, %s540_s1 }
   0x7   :  { %p358_p2 = pnand %p356_p1, %p353_p0 }
   0x9   :  { %361 = shalt.err (!%p358_p2)
}
   0xa   :  { %s362_s29 = scalar_lea.vmem %s30_s19, 128  ;;  %p367_p4 = scmp.lt.s32.totalorder %s30_s19, %s30_s19 }
   0xb   :  { %p363_p3 = scmp.ne.s32.totalorder %s30_s19, %s362_s29  ;;  %p368_p5 = scmp.lt.s32.totalorder %s362_s29, %s362_s29 }
   0xd   :  { %p369_p6 = por %p368_p5, %p367_p4 }
   0xf   :  { %p370_p7 = pnand %p369_p6, %p363_p3 }
  0x11   :  { %373 = shalt.err (!%p370_p7)
}
  0x12   :  { %32 = dma.hbm_to_vmem [thread:$0]  %s540_s1, 128, %s30_s19, [#allocation6]  }
  0x13   :  { %s374_s9 = scalar_lea.hbm %s539_s0, 128 }
  0x14   :  { %p375_p8 = scmp.ne.s32.totalorder %s539_s0, %s374_s9  ;;  %p378_p9 = scmp.lt.u32.totalorder %s374_s9, %s539_s0 }
  0x16   :  { %p380_p10 = pnand %p378_p9, %p375_p8 }
  0x18   :  { %383 = shalt.err (!%p380_p10)
}
  0x19   :  { %s384_s14 = scalar_lea.vmem %s20_s21, 128  ;;  %p389_p12 = scmp.lt.s32.totalorder %s20_s21, %s20_s21 }
  0x1a   :  { %p385_p11 = scmp.ne.s32.totalorder %s20_s21, %s384_s14  ;;  %p390_p13 = scmp.lt.s32.totalorder %s384_s14, %s384_s14 }
  0x1c   :  { %p391_p0 = por %p390_p13, %p389_p12 }
  0x1e   :  { %p392_p1 = pnand %p391_p0, %p385_p11 }
  0x20   :  { %395 = shalt.err (!%p392_p1)
}
  0x21   :  { %22 = dma.hbm_to_vmem [thread:$0]  %s539_s0, 128, %s20_s21, [#allocation3]  }
  0x22   :  { %s448_s16 = smov [#allocation7]   ;;  %s396_s20 = scalar_lea.hbm %s542_s3, 2048 }
  0x23   :  { %s40_s17 = sshll.u32 %s448_s16, 4  ;;  %p397_p2 = scmp.ne.s32.totalorder %s542_s3, %s396_s20  ;;  %s41_s17 = int_to_ptr.vmem [resolvable:$true] %s40_s17 }
  0x24   :  { %p400_p3 = scmp.lt.u32.totalorder %s396_s20, %s542_s3 }
  0x26   :  { %p402_p4 = pnand %p400_p3, %p397_p2 }
  0x28   :  { %405 = shalt.err (!%p402_p4)
}
  0x29   :  { %s406_s26 = scalar_lea.vmem %s41_s17, 2048  ;;  %p411_p6 = scmp.lt.s32.totalorder %s41_s17, %s41_s17 }
  0x2a   :  { %p407_p5 = scmp.ne.s32.totalorder %s41_s17, %s406_s26  ;;  %p412_p7 = scmp.lt.s32.totalorder %s406_s26, %s406_s26 }
  0x2c   :  { %p413_p8 = por %p412_p7, %p411_p6 }
  0x2e   :  { %p414_p9 = pnand %p413_p8, %p407_p5 }
  0x30   :  { %417 = shalt.err (!%p414_p9)
}
  0x31   :  { %s449_s0 = smov 128   ;;  %s450_s21 = smov 8  }
  0x32   :  { %46 = dma.hbm_to_vmem [thread:$0]  %s542_s3, 2048, %s41_s17, [#allocation6], %s449_s0, %s449_s0, %s450_s21  }
  0x33   :  { %440 = dma.done.wait [#allocation3], 128  }
  0x34   :  { %441 = vsyncadd [#allocation3], 4294967168 }
  0x35   :  { %442 = dma.done.wait [#allocation6], 2176  }
  0x36   :  { %443 = vsyncadd [#allocation6], 4294965120  ;;  %v451_v0 = vmov 0.0   ;;  %vm452_vm0 = vmmov 0   ;;  %v453_v1 = vmov 0.0|0.0   ;;  %vm71_vm1 = vcmask 1045504  }
  0x37   :  { %279 = vmatprep.subr.mxu0 %v451_v0  ;;  %281 = vmatprep.mubr.msk.f32.mxu0 %vm452_vm0, %v451_v0  ;;  %vm67_vm2 = vcmask 48128   ;;  %v59_v2 = vld [vmem:[#allocation5] sm:$0x3f]  ;;  %v58_v3 = vld [vmem:[#allocation2] sm:$0xff]  ;;  %v146_v4 = vld [vmem:[#allocation7] sm:$0xff]  ;;  %s454_s7 = smov [#allocation8]  }
  0x38   :  { %319 = vmatprep.subr.bf16.mxu1 %v453_v1  ;;  %316 = vmatprep.mubr.msk.f32.mxu1 %vm452_vm0, %v451_v0  ;;  %v147_v5 = vld [vmem:[#allocation7 + $0x8] sm:$0xff]  ;;  %v148_v6 = vld [vmem:[#allocation7 + $0x10] sm:$0xff]  ;;  %v149_v7 = vld [vmem:[#allocation7 + $0x18] sm:$0xff]  ;;  %s246_s8 = sshll.u32 %s454_s7, 4  ;;  %s247_s8 = int_to_ptr.vmem [resolvable:$true] %s246_s8 }
  0x39   :  { %280 = vmatpush3.msk.msra.mxu0 %vm71_vm1, %v59_v2  ;;  %v320_v8 = vpack.c.bf16 %v147_v5, %v146_v4  ;;  %v323_v9 = vpack.c.bf16 %v149_v7, %v148_v6  ;;  %v150_v10 = vld [vmem:[#allocation7 + $0x20] sm:$0xff]  ;;  %v151_v11 = vld [vmem:[#allocation7 + $0x28] sm:$0xff]  ;;  %v152_v13 = vld [vmem:[#allocation7 + $0x30] sm:$0xff]  ;;  %s418_s9 = scalar_lea.vmem %s247_s8, 128  ;;  %p423_p11 = scmp.lt.s32.totalorder %s247_s8, %s247_s8 }
  0x3a   :  { %282 = vmatmul.mubr.msk.f32.vlgmr.msra.gmra.mrb[0].mxu0 %vm67_vm2, %v58_v3  ;;  %v326_v12 = vpack.c.bf16 %v151_v11, %v150_v10  ;;  %v153_v14 = vld [vmem:[#allocation7 + $0x38] sm:$0xff]  ;;  %v154_v16 = vld [vmem:[#allocation7 + $0x40] sm:$0xff]  ;;  %v155_v17 = vld [vmem:[#allocation7 + $0x48] sm:$0xff]  ;;  %p419_p10 = scmp.ne.s32.totalorder %s247_s8, %s418_s9  ;;  %p424_p12 = scmp.lt.s32.totalorder %s418_s9, %s418_s9 }
  0x3b   :  { %321 = vmatpush3.bf16.msra.mxu1 %v320_v8  ;;  %v329_v15 = vpack.c.bf16 %v153_v14, %v152_v13  ;;  %v332_v18 = vpack.c.bf16 %v155_v17, %v154_v16  ;;  %v156_v19 = vld [vmem:[#allocation7 + $0x50] sm:$0xff]  ;;  %v157_v20 = vld [vmem:[#allocation7 + $0x58] sm:$0xff]  ;;  %v158_v22 = vld [vmem:[#allocation7 + $0x60] sm:$0xff] }
  0x3c   :  { %322 = vmatprep.subr.bf16.mxu1 %v453_v1  ;;  %v335_v21 = vpack.c.bf16 %v157_v20, %v156_v19  ;;  %v159_v23 = vld [vmem:[#allocation7 + $0x68] sm:$0xff]  ;;  %v160_v25 = vld [vmem:[#allocation7 + $0x70] sm:$0xff]  ;;  %v161_v26 = vld [vmem:[#allocation7 + $0x78] sm:$0xff]  ;;  %p425_p13 = por %p424_p12, %p423_p11 }
  0x3d   :  { %v338_v24 = vpack.c.bf16 %v159_v23, %v158_v22  ;;  %v341_v27 = vpack.c.bf16 %v161_v26, %v160_v25  ;;  %v256_v28 = vld [vmem:[%s541_s2] ss:$0 sm:$0xff] }
  0x3e   :  { %v259_v33 = vld [vmem:[%s543_s4] ss:$0 sm:$0xff]  ;;  %p426_p0 = pnand %p425_p13, %p419_p10 }
  0x3f   :  { %324 = vmatpush3.bf16.msra.mxu1 %v323_v9 }
  0x40   :  { %325 = vmatprep.subr.bf16.mxu1 %v453_v1 }
  0x43   :  { %327 = vmatpush3.bf16.msra.mxu1 %v326_v12 }
  0x44   :  { %328 = vmatprep.subr.bf16.mxu1 %v453_v1 }
  0x47   :  { %330 = vmatpush3.bf16.msra.mxu1 %v329_v15 }
  0x48   :  { %331 = vmatprep.subr.bf16.mxu1 %v453_v1 }
  0x4b   :  { %333 = vmatpush3.bf16.msra.mxu1 %v332_v18 }
  0x4c   :  { %334 = vmatprep.subr.bf16.mxu1 %v453_v1 }
  0x4f   :  { %336 = vmatpush3.bf16.msra.mxu1 %v335_v21 }
  0x50   :  { %337 = vmatprep.subr.bf16.mxu1 %v453_v1 }
  0x53   :  { %339 = vmatpush3.bf16.msra.mxu1 %v338_v24 }
  0x54   :  { %340 = vmatprep.subr.bf16.mxu1 %v453_v1 }
  0x57   :  { %342 = vmatpush3.bf16.msra.mxu1 %v341_v27 }
 0x10d   :  { %v141_v29 = vpop.f32.mrb[0].mxu0 }
 0x10e   :  { %v142_v30 = vadd.f32 %v256_v28, %v141_v29  ;;  %v283_v31 = vpop.f32.mrb[1].mxu0 }
 0x110   :  { %v145_v32 = vmax.f32 %v142_v30, 0.0 }
 0x112   :  { %317 = vmatmul.mubr.f32.vlgmr.msra.gmra.mrb[0].mxu1 %v145_v32 }
 0x1e5   :  { %v235_v34 = vpop.f32.mrb[0].mxu1 }
 0x1e6   :  { %v236_v35 = vadd.f32 %v259_v33, %v235_v34  ;;  %v318_v36 = vpop.f32.mrb[1].mxu1 }
 0x1e8   :  { %239 = vst [vmem:[#allocation8] sm:$0xff] %v236_v35 }
 0x1e9   :  { %429 = shalt.err (!%p426_p0)
}
 0x1ea   :  { %s430_s11 = scalar_lea.hbm %s544_s5, 128 }
 0x1eb   :  { %p431_p1 = scmp.ne.s32.totalorder %s544_s5, %s430_s11  ;;  %p434_p2 = scmp.lt.u32.totalorder %s430_s11, %s544_s5 }
 0x1ed   :  { %p436_p3 = pnand %p434_p2, %p431_p1 }
 0x1ef   :  { %439 = shalt.err (!%p436_p3)
}
 0x1f0   :  { %249 = dma.vmem_to_hbm [thread:$0]  %s247_s8, 128, %s544_s5, [#allocation4]  }
 0x1f1   :  { %444 = dma.done.wait [#allocation4], 128  }
 0x1f2   :  { %445 = vsyncadd [#allocation4], 4294967168 }
 0x1f3   :  { %253 = vsyncpa [#allocation3], 1 }
 0x1f4   :  { %254 = vsyncpa [#allocation6], 1 }
 0x1f5   :  { %255 = vsyncpa [#allocation4], 1 }

</bundles_post_ra>
